<compile_context>
chip_gen: v6e
topology: v6e:2x2x1
jax: 0.10.0
libtpu: 0.0.40
codegen_flags: <defaults>
</compile_context>

<pallas_src>
import functools

import jax
import jax.numpy as jnp
from jax import lax
from jax.experimental import pallas as pl
from jax.experimental.pallas import tpu as pltpu


def _round_up(x, m):
    return ((x + m - 1) // m) * m


def indrnn_kernel(x_ref, p_ref, out_ref, h_out_ref, h_scratch, *,
                  unroll, chunk, total_t, mask_tail):
    # grid = (feature_tiles [parallel], time_chunks [sequential / arbitrary])
    t_chunk = pl.program_id(1)

    @pl.when(t_chunk == 0)
    def _():
        # h0 is a zero buffer in the PyTorch module; reset per feature tile.
        h_scratch[...] = jnp.zeros_like(h_scratch)

    # Hoisted parameter loads: packed (3, S, 128) f32 block, resident across the chunk.
    p = p_ref[...]
    w, u, b = p[0], p[1], p[2]                     # each (S, 128)

    t0 = t_chunk * chunk                           # global index of first step in chunk

    def step(t, h):
        # h is carried in vregs (f32) across the time loop; no VMEM round-trip per step.
        x_t = x_ref[t].astype(jnp.float32)         # dense (S, 128) load
        h_new = jnp.tanh(x_t * w + u * h + b)
        if mask_tail:
            # Padded tail timesteps must not advance the recurrent state.
            h_new = jnp.where(t0 + t < total_t, h_new, h)
        out_ref[t] = h_new.astype(out_ref.dtype)   # dense (S, 128) store
        return h_new

    h_final = lax.fori_loop(0, x_ref.shape[0], step, h_scratch[...], unroll=unroll)

    # Persist the recurrent state for the next time chunk of this feature tile, and
    # expose the full-precision carry as the final-hidden output (resident block; the
    # value written by the last chunk is what lands in HBM).
    h_scratch[...] = h_final
    h_out_ref[...] = h_final


def indrnn_forward(x, w, u, b, *, time_chunk=256, feature_tile=8192):
    """x: (T, B, D); w, u, b: (D,).

    Returns (outputs (T, B, D) in x.dtype, final_hidden (B, D) in float32) -- matches
    PyTorch IndRNN.forward for batch_first=False, bidirectional=False.  The recurrence
    is computed in f32; pass bf16 x to halve HBM traffic on memory-bound shapes.
    """
    T, B, D = x.shape
    F = B * D
    itemsize = jnp.dtype(x.dtype).itemsize
    # Sublane packing of the I/O dtype: 8 for 32-bit, 16 for bf16, 32 for 8-bit.
    pack = max(8, 32 // max(1, min(4, itemsize)))

    # ---- Feature tiling: NS 128-lane groups, S sublanes per tile -------------------
    NS = _round_up(F, 128) // 128
    max_S = max(pack, (feature_tile // 128) // pack * pack)
    if NS <= max_S:
        S = NS                      # single full-width tile (block == full feature dim)
    else:
        # >=2 feature tiles (megacore-shardable on v7x), each a multiple of `pack`
        # sublanes and at most max_S (keeps >= ~8 vregs of work per timestep per tile).
        S = min(max_S, _round_up((NS + 1) // 2, pack))
    NS_pad = _round_up(NS, S)
    Fp = NS_pad * 128

    # ---- Time chunking --------------------------------------------------------------
    TC = int(min(time_chunk, T))

    def footprint(tc):
        blk = tc * S * 128
        # 2x double-buffered (x block + out block + params + h out) + scratch.
        return 2 * (blk * itemsize + blk * itemsize + 3 * S * 128 * 4 + S * 128 * 4) \
            + S * 128 * 4

    # Keep the working set under ~44 MiB (v7x has only 64 MiB physical VMEM per TC).
    while footprint(TC) > (44 << 20) and TC > 8:
        TC = max(8, TC // 2)
    # Prefer a TC that divides T so the output needs no tail padding / post-slice copy.
    if T % TC != 0:
        for cand in range(TC, max(TC // 2, 1) - 1, -1):
            if T % cand == 0:
                TC = cand
                break
    T_pad = _round_up(T, TC)
    mask_tail = T_pad != T

    # ---- Host-side relayout (free reshapes; pads are no-ops when already aligned) ---
    xf = x.reshape(T, F)
    if Fp != F:
        xf = jnp.pad(xf, ((0, 0), (0, Fp - F)))
    if T_pad != T:
        xf = jnp.pad(xf, ((0, T_pad - T), (0, 0)))
    xf = xf.reshape(T_pad, NS_pad, 128)

    def _flat_param(p):
        pf = jnp.broadcast_to(p.astype(jnp.float32)[None, :], (B, D)).reshape(F)
        if Fp != F:
            pf = jnp.pad(pf, (0, Fp - F))   # padded lanes: w=u=b=0 -> h stays 0 there
        return pf.reshape(NS_pad, 128)

    params = jnp.stack([_flat_param(w), _flat_param(u), _flat_param(b)], axis=0)

    grid = (NS_pad // S, T_pad // TC)
    unroll = int(min(TC, 8))
    vmem_limit = int(min(max(footprint(TC) + (2 << 20), 32 << 20), 100 << 20))

    out_flat, h_flat = pl.pallas_call(
        functools.partial(indrnn_kernel, unroll=unroll, chunk=TC, total_t=T,
                          mask_tail=mask_tail),
        out_shape=(
            jax.ShapeDtypeStruct((T_pad, NS_pad, 128), x.dtype),
            jax.ShapeDtypeStruct((NS_pad, 128), jnp.float32),
        ),
        grid_spec=pltpu.PrefetchScalarGridSpec(
            num_scalar_prefetch=0,
            grid=grid,
            in_specs=[
                pl.BlockSpec((TC, S, 128), lambda f, t: (t, f, 0)),   # x slab
                pl.BlockSpec((3, S, 128), lambda f, t: (0, f, 0)),    # packed (w, u, b)
            ],
            out_specs=[
                pl.BlockSpec((TC, S, 128), lambda f, t: (t, f, 0)),   # outputs slab
                pl.BlockSpec((S, 128), lambda f, t: (f, 0)),          # final hidden (f32)
            ],
            scratch_shapes=[pltpu.VMEM((S, 128), jnp.float32)],       # recurrent carry
        ),
        compiler_params=pltpu.CompilerParams(
            # Feature tiles are independent (megacore-shardable on v7x); the time axis
            # is the sequential recurrence.
            dimension_semantics=("parallel", "arbitrary"),
            vmem_limit_bytes=vmem_limit,
        ),
    )(xf, params)

    out = out_flat.reshape(T_pad, Fp)[:T, :F].reshape(T, B, D)
    h_last = h_flat.reshape(Fp)[:F].reshape(B, D)      # full-precision f32 carry
    return out, h_last


def indrnn_reference(x, w, u, b):
    """Pure-JAX reference (mirrors the PyTorch loop)."""
    T, B, D = x.shape
    h = jnp.zeros((B, D), jnp.float32)
    outs = []
    for t in range(T):
        h = jnp.tanh(x[t].astype(jnp.float32) * w + u * h + b)
        outs.append(h)
    return jnp.stack(outs, axis=0).astype(x.dtype), h


def _init_params(D, ku):
    # Deterministic parameter init matching IndRNNCell.reset_parameters:
    #   w <- 1.0, u <- N(0, 0.01), b <- 0.0
    w = jnp.ones((D,), dtype=jnp.float32)
    u = 0.01 * jax.random.normal(ku, (D,), dtype=jnp.float32)
    b = jnp.zeros((D,), dtype=jnp.float32)
    return w, u, b


if __name__ == "__main__":
    key = jax.random.PRNGKey(0)
    k1, k2, k3, k4, k5, k6 = jax.random.split(key, 6)

    # --- Test A: f32, lane-exact shapes (B*D = 128), no padding anywhere. -----------
    T, B, D = 8, 4, 32
    x = jax.random.normal(k1, (T, B, D), dtype=jnp.float32)
    w, u, b = _init_params(D, k2)
    out, h_last = indrnn_forward(x, w, u, b)
    jax.block_until_ready((out, h_last))
    ref_out, ref_h = indrnn_reference(x, w, u, b)
    assert out.shape == (T, B, D) and h_last.shape == (B, D)
    assert jnp.allclose(out, ref_out, atol=1e-4, rtol=1e-4)
    assert jnp.allclose(h_last, ref_h, atol=1e-4, rtol=1e-4)

    # --- Test B: f32 with feature padding (B*D=150) and masked time padding ---------
    # (T=13 prime, time_chunk=5 -> T_pad=15, tail steps masked so h_last stays exact).
    T, B, D = 13, 3, 50
    x = jax.random.normal(k3, (T, B, D), dtype=jnp.float32)
    w, u, b = _init_params(D, k4)
    out, h_last = indrnn_forward(x, w, u, b, time_chunk=5)
    jax.block_until_ready((out, h_last))
    ref_out, ref_h = indrnn_reference(x, w, u, b)
    assert jnp.allclose(out, ref_out, atol=1e-4, rtol=1e-4)
    assert jnp.allclose(h_last, ref_h, atol=1e-4, rtol=1e-4)

    # --- Test C: bf16 I/O (recommended memory-bound config), aligned tiles. ---------
    T, B, D = 16, 4, 512
    x = jax.random.normal(k5, (T, B, D), dtype=jnp.float32).astype(jnp.bfloat16)
    w, u, b = _init_params(D, k6)
    out, h_last = indrnn_forward(x, w, u, b)
    jax.block_until_ready((out, h_last))
    ref_out, ref_h = indrnn_reference(x, w, u, b)
    assert out.dtype == jnp.bfloat16 and h_last.dtype == jnp.float32
    assert jnp.allclose(out.astype(jnp.float32), ref_out.astype(jnp.float32),
                        atol=2e-2, rtol=2e-2)
    assert jnp.allclose(h_last, ref_h, atol=5e-3, rtol=5e-3)

    print("KERNEL_OK")
</pallas_src>

<mosaic_0001>
module attributes {stable_mosaic.version = 11 : i64} {
  func.func @indrnn_kernel(%arg0: i32, %arg1: i32, %arg2: memref<8x1x128xf32, #tpu.memory_space<vmem>>, %arg3: memref<3x1x128xf32, #tpu.memory_space<vmem>>, %arg4: memref<8x1x128xf32, #tpu.memory_space<vmem>>, %arg5: memref<1x128xf32, #tpu.memory_space<vmem>>, %arg6: memref<1x128xf32, #tpu.memory_space<vmem>>) attributes {dimension_semantics = [#tpu.dimension_semantics<parallel>, #tpu.dimension_semantics<arbitrary>], iteration_bounds = array<i64: 1, 1>, scalar_prefetch = 0 : i64, scratch_operands = 1 : i64, tpu.core_type = #tpu.core_type<tc>, window_params = [{transform_indices = @transform_0, window_bounds = array<i64: 8, 1, 128>}, {transform_indices = @transform_1, window_bounds = array<i64: 3, 1, 128>}, {transform_indices = @transform_2, window_bounds = array<i64: 8, 1, 128>}, {transform_indices = @transform_3, window_bounds = array<i64: 1, 128>}]} {
    %c0_i32 = arith.constant 0 : i32
    %0 = arith.cmpi eq, %arg1, %c0_i32 : i32
    %1 = arith.extui %0 : i1 to i32
    %c0_i32_0 = arith.constant 0 : i32
    %2 = arith.cmpi ne, %1, %c0_i32_0 : i32
    scf.if %2 {
      %cst = arith.constant 0.000000e+00 : f32
      %109 = vector.broadcast %cst : f32 to vector<1x128xf32>
      %c0_42 = arith.constant 0 : index
      %c0_43 = arith.constant 0 : index
      %110 = vector.load %arg6[%c0_42, %c0_43] : memref<1x128xf32, #tpu.memory_space<vmem>>, vector<1x128xf32>
      tpu.vector_store %arg6[%c0_42, %c0_43], %109 {strides = array<i32>} : memref<1x128xf32, #tpu.memory_space<vmem>>, vector<1x128xf32>,
    } else {
    }
    %c0 = arith.constant 0 : index
    %c0_1 = arith.constant 0 : index
    %c0_2 = arith.constant 0 : index
    %3 = vector.load %arg3[%c0, %c0_1, %c0_2] : memref<3x1x128xf32, #tpu.memory_space<vmem>>, vector<3x1x128xf32>
    %4 = vector.extract_strided_slice %3 {offsets = [0, 0, 0], sizes = [1, 1, 128], strides = [1, 1, 1]} : vector<3x1x128xf32> to vector<1x1x128xf32>
    %5 = vector.shape_cast %4 : vector<1x1x128xf32> to vector<1x128xf32>
    %6 = vector.extract_strided_slice %3 {offsets = [1, 0, 0], sizes = [1, 1, 128], strides = [1, 1, 1]} : vector<3x1x128xf32> to vector<1x1x128xf32>
    %7 = vector.shape_cast %6 : vector<1x1x128xf32> to vector<1x128xf32>
    %8 = vector.extract_strided_slice %3 {offsets = [2, 0, 0], sizes = [1, 1, 128], strides = [1, 1, 1]} : vector<3x1x128xf32> to vector<1x1x128xf32>
    %9 = vector.shape_cast %8 : vector<1x1x128xf32> to vector<1x128xf32>
    %c0_3 = arith.constant 0 : index
    %c0_4 = arith.constant 0 : index
    %10 = vector.load %arg6[%c0_3, %c0_4] : memref<1x128xf32, #tpu.memory_space<vmem>>, vector<1x128xf32>
    %c0_i32_5 = arith.constant 0 : i32
    %11 = arith.index_cast %c0_i32_5 : i32 to index
    %c0_6 = arith.constant 0 : index
    %c0_7 = arith.constant 0 : index
    %12 = vector.load %arg2[%11, %c0_6, %c0_7] : memref<8x1x128xf32, #tpu.memory_space<vmem>>, vector<1x1x128xf32>
    %13 = vector.shape_cast %12 : vector<1x1x128xf32> to vector<1x128xf32>
    %14 = arith.mulf %13, %5 : vector<1x128xf32>
    %15 = arith.mulf %7, %10 : vector<1x128xf32>
    %16 = arith.addf %14, %15 : vector<1x128xf32>
    %17 = arith.addf %16, %9 : vector<1x128xf32>
    %18 = math.tanh %17 : vector<1x128xf32>
    %19 = arith.index_cast %c0_i32_5 : i32 to index
    %c0_8 = arith.constant 0 : index
    %c0_9 = arith.constant 0 : index
    %20 = vector.load %arg4[%19, %c0_8, %c0_9] : memref<8x1x128xf32, #tpu.memory_space<vmem>>, vector<1x1x128xf32>
    %21 = vector.shape_cast %20 : vector<1x1x128xf32> to vector<1x128xf32>
    %22 = vector.shape_cast %18 : vector<1x128xf32> to vector<1x1x128xf32>
    tpu.vector_store %arg4[%19, %c0_8, %c0_9], %22 {strides = array<i32>} : memref<8x1x128xf32, #tpu.memory_space<vmem>>, vector<1x1x128xf32>,
    %c1_i32 = arith.constant 1 : i32
    %23 = arith.index_cast %c1_i32 : i32 to index
    %c0_10 = arith.constant 0 : index
    %c0_11 = arith.constant 0 : index
    %24 = vector.load %arg2[%23, %c0_10, %c0_11] : memref<8x1x128xf32, #tpu.memory_space<vmem>>, vector<1x1x128xf32>
    %25 = vector.shape_cast %24 : vector<1x1x128xf32> to vector<1x128xf32>
    %26 = arith.mulf %25, %5 : vector<1x128xf32>
    %27 = arith.mulf %7, %18 : vector<1x128xf32>
    %28 = arith.addf %26, %27 : vector<1x128xf32>
    %29 = arith.addf %28, %9 : vector<1x128xf32>
    %30 = math.tanh %29 : vector<1x128xf32>
    %31 = arith.index_cast %c1_i32 : i32 to index
    %c0_12 = arith.constant 0 : index
    %c0_13 = arith.constant 0 : index
    %32 = vector.load %arg4[%31, %c0_12, %c0_13] : memref<8x1x128xf32, #tpu.memory_space<vmem>>, vector<1x1x128xf32>
    %33 = vector.shape_cast %32 : vector<1x1x128xf32> to vector<1x128xf32>
    %34 = vector.shape_cast %30 : vector<1x128xf32> to vector<1x1x128xf32>
    tpu.vector_store %arg4[%31, %c0_12, %c0_13], %34 {strides = array<i32>} : memref<8x1x128xf32, #tpu.memory_space<vmem>>, vector<1x1x128xf32>,
    %c2_i32 = arith.constant 2 : i32
    %35 = arith.index_cast %c2_i32 : i32 to index
    %c0_14 = arith.constant 0 : index
    %c0_15 = arith.constant 0 : index
    %36 = vector.load %arg2[%35, %c0_14, %c0_15] : memref<8x1x128xf32, #tpu.memory_space<vmem>>, vector<1x1x128xf32>
    %37 = vector.shape_cast %36 : vector<1x1x128xf32> to vector<1x128xf32>
    %38 = arith.mulf %37, %5 : vector<1x128xf32>
    %39 = arith.mulf %7, %30 : vector<1x128xf32>
    %40 = arith.addf %38, %39 : vector<1x128xf32>
    %41 = arith.addf %40, %9 : vector<1x128xf32>
    %42 = math.tanh %41 : vector<1x128xf32>
    %43 = arith.index_cast %c2_i32 : i32 to index
    %c0_16 = arith.constant 0 : index
    %c0_17 = arith.constant 0 : index
    %44 = vector.load %arg4[%43, %c0_16, %c0_17] : memref<8x1x128xf32, #tpu.memory_space<vmem>>, vector<1x1x128xf32>
    %45 = vector.shape_cast %44 : vector<1x1x128xf32> to vector<1x128xf32>
    %46 = vector.shape_cast %42 : vector<1x128xf32> to vector<1x1x128xf32>
    tpu.vector_store %arg4[%43, %c0_16, %c0_17], %46 {strides = array<i32>} : memref<8x1x128xf32, #tpu.memory_space<vmem>>, vector<1x1x128xf32>,
    %c3_i32 = arith.constant 3 : i32
    %47 = arith.index_cast %c3_i32 : i32 to index
    %c0_18 = arith.constant 0 : index
    %c0_19 = arith.constant 0 : index
    %48 = vector.load %arg2[%47, %c0_18, %c0_19] : memref<8x1x128xf32, #tpu.memory_space<vmem>>, vector<1x1x128xf32>
    %49 = vector.shape_cast %48 : vector<1x1x128xf32> to vector<1x128xf32>
    %50 = arith.mulf %49, %5 : vector<1x128xf32>
    %51 = arith.mulf %7, %42 : vector<1x128xf32>
    %52 = arith.addf %50, %51 : vector<1x128xf32>
    %53 = arith.addf %52, %9 : vector<1x128xf32>
    %54 = math.tanh %53 : vector<1x128xf32>
    %55 = arith.index_cast %c3_i32 : i32 to index
    %c0_20 = arith.constant 0 : index
    %c0_21 = arith.constant 0 : index
    %56 = vector.load %arg4[%55, %c0_20, %c0_21] : memref<8x1x128xf32, #tpu.memory_space<vmem>>, vector<1x1x128xf32>
    %57 = vector.shape_cast %56 : vector<1x1x128xf32> to vector<1x128xf32>
    %58 = vector.shape_cast %54 : vector<1x128xf32> to vector<1x1x128xf32>
    tpu.vector_store %arg4[%55, %c0_20, %c0_21], %58 {strides = array<i32>} : memref<8x1x128xf32, #tpu.memory_space<vmem>>, vector<1x1x128xf32>,
    %c4_i32 = arith.constant 4 : i32
    %59 = arith.index_cast %c4_i32 : i32 to index
    %c0_22 = arith.constant 0 : index
    %c0_23 = arith.constant 0 : index
    %60 = vector.load %arg2[%59, %c0_22, %c0_23] : memref<8x1x128xf32, #tpu.memory_space<vmem>>, vector<1x1x128xf32>
    %61 = vector.shape_cast %60 : vector<1x1x128xf32> to vector<1x128xf32>
    %62 = arith.mulf %61, %5 : vector<1x128xf32>
    %63 = arith.mulf %7, %54 : vector<1x128xf32>
    %64 = arith.addf %62, %63 : vector<1x128xf32>
    %65 = arith.addf %64, %9 : vector<1x128xf32>
    %66 = math.tanh %65 : vector<1x128xf32>
    %67 = arith.index_cast %c4_i32 : i32 to index
    %c0_24 = arith.constant 0 : index
    %c0_25 = arith.constant 0 : index
    %68 = vector.load %arg4[%67, %c0_24, %c0_25] : memref<8x1x128xf32, #tpu.memory_space<vmem>>, vector<1x1x128xf32>
    %69 = vector.shape_cast %68 : vector<1x1x128xf32> to vector<1x128xf32>
    %70 = vector.shape_cast %66 : vector<1x128xf32> to vector<1x1x128xf32>
    tpu.vector_store %arg4[%67, %c0_24, %c0_25], %70 {strides = array<i32>} : memref<8x1x128xf32, #tpu.memory_space<vmem>>, vector<1x1x128xf32>,
    %c5_i32 = arith.constant 5 : i32
    %71 = arith.index_cast %c5_i32 : i32 to index
    %c0_26 = arith.constant 0 : index
    %c0_27 = arith.constant 0 : index
    %72 = vector.load %arg2[%71, %c0_26, %c0_27] : memref<8x1x128xf32, #tpu.memory_space<vmem>>, vector<1x1x128xf32>
    %73 = vector.shape_cast %72 : vector<1x1x128xf32> to vector<1x128xf32>
    %74 = arith.mulf %73, %5 : vector<1x128xf32>
    %75 = arith.mulf %7, %66 : vector<1x128xf32>
    %76 = arith.addf %74, %75 : vector<1x128xf32>
    %77 = arith.addf %76, %9 : vector<1x128xf32>
    %78 = math.tanh %77 : vector<1x128xf32>
    %79 = arith.index_cast %c5_i32 : i32 to index
    %c0_28 = arith.constant 0 : index
    %c0_29 = arith.constant 0 : index
    %80 = vector.load %arg4[%79, %c0_28, %c0_29] : memref<8x1x128xf32, #tpu.memory_space<vmem>>, vector<1x1x128xf32>
    %81 = vector.shape_cast %80 : vector<1x1x128xf32> to vector<1x128xf32>
    %82 = vector.shape_cast %78 : vector<1x128xf32> to vector<1x1x128xf32>
    tpu.vector_store %arg4[%79, %c0_28, %c0_29], %82 {strides = array<i32>} : memref<8x1x128xf32, #tpu.memory_space<vmem>>, vector<1x1x128xf32>,
    %c6_i32 = arith.constant 6 : i32
    %83 = arith.index_cast %c6_i32 : i32 to index
    %c0_30 = arith.constant 0 : index
    %c0_31 = arith.constant 0 : index
    %84 = vector.load %arg2[%83, %c0_30, %c0_31] : memref<8x1x128xf32, #tpu.memory_space<vmem>>, vector<1x1x128xf32>
    %85 = vector.shape_cast %84 : vector<1x1x128xf32> to vector<1x128xf32>
    %86 = arith.mulf %85, %5 : vector<1x128xf32>
    %87 = arith.mulf %7, %78 : vector<1x128xf32>
    %88 = arith.addf %86, %87 : vector<1x128xf32>
    %89 = arith.addf %88, %9 : vector<1x128xf32>
    %90 = math.tanh %89 : vector<1x128xf32>
    %91 = arith.index_cast %c6_i32 : i32 to index
    %c0_32 = arith.constant 0 : index
    %c0_33 = arith.constant 0 : index
    %92 = vector.load %arg4[%91, %c0_32, %c0_33] : memref<8x1x128xf32, #tpu.memory_space<vmem>>, vector<1x1x128xf32>
    %93 = vector.shape_cast %92 : vector<1x1x128xf32> to vector<1x128xf32>
    %94 = vector.shape_cast %90 : vector<1x128xf32> to vector<1x1x128xf32>
    tpu.vector_store %arg4[%91, %c0_32, %c0_33], %94 {strides = array<i32>} : memref<8x1x128xf32, #tpu.memory_space<vmem>>, vector<1x1x128xf32>,
    %c7_i32 = arith.constant 7 : i32
    %95 = arith.index_cast %c7_i32 : i32 to index
    %c0_34 = arith.constant 0 : index
    %c0_35 = arith.constant 0 : index
    %96 = vector.load %arg2[%95, %c0_34, %c0_35] : memref<8x1x128xf32, #tpu.memory_space<vmem>>, vector<1x1x128xf32>
    %97 = vector.shape_cast %96 : vector<1x1x128xf32> to vector<1x128xf32>
    %98 = arith.mulf %97, %5 : vector<1x128xf32>
    %99 = arith.mulf %7, %90 : vector<1x128xf32>
    %100 = arith.addf %98, %99 : vector<1x128xf32>
    %101 = arith.addf %100, %9 : vector<1x128xf32>
    %102 = math.tanh %101 : vector<1x128xf32>
    %103 = arith.index_cast %c7_i32 : i32 to index
    %c0_36 = arith.constant 0 : index
    %c0_37 = arith.constant 0 : index
    %104 = vector.load %arg4[%103, %c0_36, %c0_37] : memref<8x1x128xf32, #tpu.memory_space<vmem>>, vector<1x1x128xf32>
    %105 = vector.shape_cast %104 : vector<1x1x128xf32> to vector<1x128xf32>
    %106 = vector.shape_cast %102 : vector<1x128xf32> to vector<1x1x128xf32>
    tpu.vector_store %arg4[%103, %c0_36, %c0_37], %106 {strides = array<i32>} : memref<8x1x128xf32, #tpu.memory_space<vmem>>, vector<1x1x128xf32>,
    %c8_i32 = arith.constant 8 : i32
    %c0_38 = arith.constant 0 : index
    %c0_39 = arith.constant 0 : index
    %107 = vector.load %arg6[%c0_38, %c0_39] : memref<1x128xf32, #tpu.memory_space<vmem>>, vector<1x128xf32>
    tpu.vector_store %arg6[%c0_38, %c0_39], %102 {strides = array<i32>} : memref<1x128xf32, #tpu.memory_space<vmem>>, vector<1x128xf32>,
    %c0_40 = arith.constant 0 : index
    %c0_41 = arith.constant 0 : index
    %108 = vector.load %arg5[%c0_40, %c0_41] : memref<1x128xf32, #tpu.memory_space<vmem>>, vector<1x128xf32>
    tpu.vector_store %arg5[%c0_40, %c0_41], %102 {strides = array<i32>} : memref<1x128xf32, #tpu.memory_space<vmem>>, vector<1x128xf32>,
    return
  }
  func.func @transform_0(%arg0: i32, %arg1: i32) -> (i32, i32, i32) {
    %c0_i32 = arith.constant 0 : i32
    %c0_i32_0 = arith.constant 0 : i32
    return %arg1, %arg0, %c0_i32 : i32, i32, i32
  }
  func.func @transform_1(%arg0: i32, %arg1: i32) -> (i32, i32, i32) {
    %c0_i32 = arith.constant 0 : i32
    %c0_i32_0 = arith.constant 0 : i32
    %c0_i32_1 = arith.constant 0 : i32
    return %c0_i32, %arg0, %c0_i32_0 : i32, i32, i32
  }
  func.func @transform_2(%arg0: i32, %arg1: i32) -> (i32, i32, i32) {
    %c0_i32 = arith.constant 0 : i32
    %c0_i32_0 = arith.constant 0 : i32
    return %arg1, %arg0, %c0_i32 : i32, i32, i32
  }
  func.func @transform_3(%arg0: i32, %arg1: i32) -> (i32, i32) {
    %c0_i32 = arith.constant 0 : i32
    %c0_i32_0 = arith.constant 0 : i32
    return %arg0, %c0_i32 : i32, i32
  }
}

</mosaic_0001>

<bundles_post_ra>
// kernel: tpu_custom_call.1
= control target key start
LH: loop header
LB: loop body
LE: loop exit
PB: predicated region body
PF: predicated region fallthrough
CT: control target
= control target key end

     0   :  { %9 = vsyncpa [#allocation4], 0  ;;  %s315_s0 = inlined_call_operand.hbm [shape: f32[8,1,128], index: 0, kind: input, shape index: {}]   ;;  %s316_s1 = inlined_call_operand.hbm [shape: f32[3,1,128], index: 1, kind: input, shape index: {}]   ;;  %s317_s2 = inlined_call_operand.hbm [shape: f32[8,1,128], index: 2, kind: output, shape index: {0}]   ;;  %s318_s3 = inlined_call_operand.hbm [shape: f32[1,128], index: 3, kind: output, shape index: {1}]  }
   0x1   :  { %10 = vsyncpa [#allocation7], 0 }
   0x2   :  { %11 = vsyncpa [#allocation5], 0 }
   0x3   :  { %12 = vsyncpa [#allocation10], 0  ;;  %s267_s12 = smov [#allocation3]  }
   0x4   :  { %s18_s13 = sshll.u32 %s267_s12, 4  ;;  %s19_s13 = int_to_ptr.vmem [resolvable:$true] %s18_s13 }
   0x5   :  { %s187_s14 = scalar_lea.vmem %s19_s13, 128  ;;  %p192_p1 = scmp.lt.s32.totalorder %s19_s13, %s19_s13 }
   0x6   :  { %p188_p0 = scmp.ne.s32.totalorder %s19_s13, %s187_s14  ;;  %p193_p2 = scmp.lt.s32.totalorder %s187_s14, %s187_s14 }
   0x8   :  { %p194_p3 = por %p193_p2, %p192_p1 }
   0xa   :  { %p195_p4 = pnand %p194_p3, %p188_p0 }
   0xc   :  { %198 = shalt.err (!%p195_p4)
}
   0xd   :  { %s268_s15 = smov 16   ;;  %s269_s16 = smov 1  }
   0xe   :  { %24 = dma.hbm_to_vmem [thread:$0]  %s315_s0, 128, %s19_s13, [#allocation4], %s268_s15, %s268_s15, %s269_s16  }
   0xf   :  { %s270_s19 = smov [#allocation6]  }
  0x10   :  { %s30_s20 = sshll.u32 %s270_s19, 4  ;;  %s31_s20 = int_to_ptr.vmem [resolvable:$true] %s30_s20 }
  0x11   :  { %s207_s21 = scalar_lea.vmem %s31_s20, 48  ;;  %s211_s22 = scalar_lea.vmem %s31_s20, 64 }
  0x12   :  { %p208_p5 = scmp.ne.s32.totalorder %s31_s20, %s207_s21  ;;  %p212_p6 = scmp.lt.s32.totalorder %s31_s20, %s31_s20 }
  0x13   :  { %p213_p7 = scmp.lt.s32.totalorder %s211_s22, %s207_s21 }
  0x15   :  { %p214_p8 = por %p213_p7, %p212_p6 }
  0x17   :  { %p215_p9 = pnand %p214_p8, %p208_p5 }
  0x19   :  { %218 = shalt.err (!%p215_p9)
}
  0x1a   :  { %36 = dma.hbm_to_vmem [thread:$0]  %s316_s1, 48, %s31_s20, [#allocation7], %s268_s15, %s268_s15, %s269_s16  }
  0x1b   :  { %259 = dma.done.wait [#allocation4], 128  }
  0x1c   :  { %260 = vsyncadd [#allocation4], 4294967168 }
  0x1d   :  { %261 = dma.done.wait [#allocation7], 48  }
  0x1e   :  { %262 = vsyncadd [#allocation7], 4294967248  ;;  %v271_v0 = vmov 0.0   ;;  %v48_v1 = vld [vmem:[#allocation6] sm:$0x1]  ;;  %s272_s0 = smov [#allocation8]  }
  0x1f   :  { %47 = vst [vmem:[#allocation2] sm:$0x1] %v271_v0  ;;  %v49_v2 = vld [vmem:[#allocation6 + $0x1] sm:$0x1]  ;;  %v52_v4 = vld [vmem:[#allocation3] sm:$0x1] }
  0x20   :  { %v53_v5 = vmul.f32 %v52_v4, %v48_v1  ;;  %v50_v7 = vld [vmem:[#allocation6 + $0x2] sm:$0x1]  ;;  %v60_v10 = vld [vmem:[#allocation3 + $0x1] sm:$0x1]  ;;  %v69_v16 = vld [vmem:[#allocation3 + $0x2] sm:$0x1] }
  0x21   :  { %v61_v11 = vmul.f32 %v60_v10, %v48_v1  ;;  %v70_v17 = vmul.f32 %v69_v16, %v48_v1  ;;  %v78_v22 = vld [vmem:[#allocation3 + $0x3] sm:$0x1]  ;;  %v87_v28 = vld [vmem:[#allocation3 + $0x4] sm:$0x1]  ;;  %v96_v34 = vld [vmem:[#allocation3 + $0x5] sm:$0x1] }
  0x22   :  { %v79_v23 = vmul.f32 %v78_v22, %v48_v1  ;;  %v88_v29 = vmul.f32 %v87_v28, %v48_v1  ;;  %v97_v35 = vmul.f32 %v96_v34, %v48_v1  ;;  %v105_v40 = vld [vmem:[#allocation3 + $0x6] sm:$0x1]  ;;  %v114_v46 = vld [vmem:[#allocation3 + $0x7] sm:$0x1]  ;;  %s129_s1 = sshll.u32 %s272_s0, 4  ;;  %s273_s25 = smov [#allocation9]   ;;  %s130_s1 = int_to_ptr.vmem [resolvable:$true] %s129_s1 }
  0x23   :  { %v106_v41 = vmul.f32 %v105_v40, %v48_v1  ;;  %v115_v47 = vmul.f32 %v114_v46, %v48_v1  ;;  %s142_s26 = sshll.u32 %s273_s25, 4  ;;  %s219_s27 = scalar_lea.vmem %s130_s1, 128  ;;  %s143_s26 = int_to_ptr.vmem [resolvable:$true] %s142_s26 }
  0x24   :  { %p220_p10 = scmp.ne.s32.totalorder %s130_s1, %s219_s27  ;;  %p224_p11 = scmp.lt.s32.totalorder %s130_s1, %s130_s1 }
  0x25   :  { %p225_p12 = scmp.lt.s32.totalorder %s219_s27, %s219_s27 }
  0x26   :  { %v51_v3 = vld [vmem:[#allocation2] sm:$0x1] }
  0x27   :  { %v54_v6 = vmul.f32 %v51_v3, %v49_v2  ;;  %p226_p13 = por %p225_p12, %p224_p11 }
  0x29   :  { %v55_v8 = vadd.f32 %v54_v6, %v53_v5  ;;  %p227_p0 = pnand %p226_p13, %p220_p10 }
  0x2b   :  { %v56_v9 = vadd.f32 %v55_v8, %v50_v7 }
  0x2d   :  { %163 = vtanh.f32 %v56_v9 }
  0x3a   :  { %v164_v12 = vpop.eup %163 }
  0x3b   :  { %58 = vst [vmem:[#allocation8] sm:$0x1] %v164_v12  ;;  %v62_v13 = vmul.f32 %v164_v12, %v49_v2 }
  0x3d   :  { %v63_v14 = vadd.f32 %v62_v13, %v61_v11 }
  0x3f   :  { %v64_v15 = vadd.f32 %v63_v14, %v50_v7 }
  0x41   :  { %165 = vtanh.f32 %v64_v15 }
  0x4e   :  { %v166_v18 = vpop.eup %165 }
  0x4f   :  { %67 = vst [vmem:[#allocation8 + $0x1] sm:$0x1] %v166_v18  ;;  %v71_v19 = vmul.f32 %v166_v18, %v49_v2 }
  0x51   :  { %v72_v20 = vadd.f32 %v71_v19, %v70_v17 }
  0x53   :  { %v73_v21 = vadd.f32 %v72_v20, %v50_v7 }
  0x55   :  { %167 = vtanh.f32 %v73_v21 }
  0x62   :  { %v168_v24 = vpop.eup %167 }
  0x63   :  { %76 = vst [vmem:[#allocation8 + $0x2] sm:$0x1] %v168_v24  ;;  %v80_v25 = vmul.f32 %v168_v24, %v49_v2 }
  0x65   :  { %v81_v26 = vadd.f32 %v80_v25, %v79_v23 }
  0x67   :  { %v82_v27 = vadd.f32 %v81_v26, %v50_v7 }
  0x69   :  { %169 = vtanh.f32 %v82_v27 }
  0x76   :  { %v170_v30 = vpop.eup %169 }
  0x77   :  { %85 = vst [vmem:[#allocation8 + $0x3] sm:$0x1] %v170_v30  ;;  %v89_v31 = vmul.f32 %v170_v30, %v49_v2 }
  0x79   :  { %v90_v32 = vadd.f32 %v89_v31, %v88_v29 }
  0x7b   :  { %v91_v33 = vadd.f32 %v90_v32, %v50_v7 }
  0x7d   :  { %171 = vtanh.f32 %v91_v33 }
  0x8a   :  { %v172_v36 = vpop.eup %171 }
  0x8b   :  { %94 = vst [vmem:[#allocation8 + $0x4] sm:$0x1] %v172_v36  ;;  %v98_v37 = vmul.f32 %v172_v36, %v49_v2 }
  0x8d   :  { %v99_v38 = vadd.f32 %v98_v37, %v97_v35 }
  0x8f   :  { %v100_v39 = vadd.f32 %v99_v38, %v50_v7 }
  0x91   :  { %173 = vtanh.f32 %v100_v39 }
  0x9e   :  { %v174_v42 = vpop.eup %173 }
  0x9f   :  { %103 = vst [vmem:[#allocation8 + $0x5] sm:$0x1] %v174_v42  ;;  %v107_v43 = vmul.f32 %v174_v42, %v49_v2 }
  0xa1   :  { %v108_v44 = vadd.f32 %v107_v43, %v106_v41 }
  0xa3   :  { %v109_v45 = vadd.f32 %v108_v44, %v50_v7 }
  0xa5   :  { %175 = vtanh.f32 %v109_v45 }
  0xb2   :  { %v176_v48 = vpop.eup %175 }
  0xb3   :  { %112 = vst [vmem:[#allocation8 + $0x6] sm:$0x1] %v176_v48  ;;  %v116_v49 = vmul.f32 %v176_v48, %v49_v2 }
  0xb5   :  { %v117_v50 = vadd.f32 %v116_v49, %v115_v47 }
  0xb7   :  { %v118_v51 = vadd.f32 %v117_v50, %v50_v7 }
  0xb9   :  { %177 = vtanh.f32 %v118_v51 }
  0xc6   :  { %v178_v52 = vpop.eup %177 }
  0xc7   :  { %121 = vst [vmem:[#allocation8 + $0x7] sm:$0x1] %v178_v52  ;;  %122 = vst [vmem:[#allocation2] sm:$0x1] %v178_v52 }
  0xc8   :  { %123 = vst [vmem:[#allocation9] sm:$0x1] %v178_v52 }
  0xc9   :  { %230 = shalt.err (!%p227_p0)
}
  0xca   :  { %135 = dma.vmem_to_hbm [thread:$0]  %s130_s1, 128, %s317_s2, [#allocation5], %s268_s15, %s268_s15, %s269_s16  }
  0xcb   :  { %s239_s30 = scalar_lea.vmem %s143_s26, 16  ;;  %s243_s4 = scalar_lea.vmem %s143_s26, 32 }
  0xcc   :  { %p240_p1 = scmp.ne.s32.totalorder %s143_s26, %s239_s30  ;;  %p244_p2 = scmp.lt.s32.totalorder %s143_s26, %s143_s26 }
  0xcd   :  { %p245_p3 = scmp.lt.s32.totalorder %s243_s4, %s239_s30 }
  0xcf   :  { %p246_p4 = por %p245_p3, %p244_p2 }
  0xd1   :  { %p247_p5 = pnand %p246_p4, %p240_p1 }
  0xd3   :  { %250 = shalt.err (!%p247_p5)
}
  0xd4   :  { %145 = dma.vmem_to_hbm [thread:$0]  %s143_s26, 16, %s318_s3, [#allocation10]  }
  0xd5   :  { %263 = dma.done.wait [#allocation5], 128  }
  0xd6   :  { %264 = vsyncadd [#allocation5], 4294967168 }
  0xd7   :  { %265 = dma.done.wait [#allocation10], 16  }
  0xd8   :  { %266 = vsyncadd [#allocation10], 4294967280 }
  0xd9   :  { %152 = vsyncpa [#allocation4], 1 }
  0xda   :  { %153 = vsyncpa [#allocation7], 1 }
  0xdb   :  { %154 = vsyncpa [#allocation5], 1 }
  0xdc   :  { %155 = vsyncpa [#allocation10], 1 }

</bundles_post_ra>
